<compile_context>
chip_gen: v6e
topology: v6e:2x2x1
jax: 0.10.0
libtpu: 0.0.40
codegen_flags: <defaults>
</compile_context>

<pallas_src>
import functools

import jax
import jax.numpy as jnp
from jax.experimental import pallas as pl
from jax.experimental.pallas import tpu as pltpu

_LANE = 128
_SUBLANE = 8


def _round_up(n, m):
    return ((n + m - 1) // m) * m


# ---------------------------------------------------------------------------
# kernel
# ---------------------------------------------------------------------------
def _vae_kernel(x_ref, eps_ref, w_ref, b_ref, xmean_ref, lat_ref, *,
                Din, Dh, Dl, offs):
    """One batch tile of the full VAE forward pass.

    x_ref     : (TILE_B, Din)   bf16
    eps_ref   : (TILE_B, Dl)    f32
    w_ref     : (R, Wmax)       bf16   packed weight blob (static row offsets)
    b_ref     : (8, Wmax)       f32    packed bias blob (one bias per row)
    xmean_ref : (TILE_B, Din)   f32
    lat_ref   : (TILE_B, 3*Dl)  f32    [ z | z_mean | z_log_var ]
    """
    f32 = jnp.float32
    bf16 = jnp.bfloat16

    x = x_ref[...]          # bf16
    eps = eps_ref[...]      # f32

    # ---- encode: q_z(x) = ReLU(Linear) -> ReLU(Linear) ----
    h = jnp.dot(x, w_ref[offs["w1"]:offs["w1"] + Din, :Dh],
                preferred_element_type=f32)
    h = jnp.maximum(h + b_ref[0:1, :Dh], 0.0)

    h = jnp.dot(h.astype(bf16), w_ref[offs["w2"]:offs["w2"] + Dh, :Dh],
                preferred_element_type=f32)
    h = jnp.maximum(h + b_ref[1:2, :Dh], 0.0)

    # ---- fused heads: [z_mean | z_log_var] in one matmul ----
    mv = jnp.dot(h.astype(bf16), w_ref[offs["whv"]:offs["whv"] + Dh, :2 * Dl],
                 preferred_element_type=f32) + b_ref[2:3, :2 * Dl]
    z_mean = mv[:, :Dl]
    z_log_var = mv[:, Dl:]

    # ---- reparameterize: z = mean + eps * exp(0.5*log_var) (f32 VPU + EUP) ----
    z = z_mean + eps * jnp.exp(0.5 * z_log_var)

    # ---- decode: ReLU(Linear, no bias) -> ReLU(Linear) -> Linear ----
    g = jnp.dot(z.astype(bf16), w_ref[offs["g1"]:offs["g1"] + Dl, :Dh],
                preferred_element_type=f32)
    g = jnp.maximum(g, 0.0)

    g = jnp.dot(g.astype(bf16), w_ref[offs["g2"]:offs["g2"] + Dh, :Dh],
                preferred_element_type=f32)
    g = jnp.maximum(g + b_ref[3:4, :Dh], 0.0)

    x_mean = jnp.dot(g.astype(bf16), w_ref[offs["g3"]:offs["g3"] + Dh, :Din],
                     preferred_element_type=f32) + b_ref[4:5, :Din]

    # lane-dense stores
    xmean_ref[...] = x_mean
    lat_ref[...] = jnp.concatenate([z, z_mean, z_log_var], axis=-1)


# ---------------------------------------------------------------------------
# parameter packing: 13 small tensors -> one bf16 weight blob + one f32 bias blob
# ---------------------------------------------------------------------------
def pack_params(p, input_dim, hidden_dim, latent_dim):
    Din = _round_up(input_dim, _LANE)
    Dh = _round_up(hidden_dim, _LANE)
    Dl = _round_up(latent_dim, _LANE)
    Wmax = max(Dh, 2 * Dl, Din)

    offs = {"w1": 0}
    offs["w2"] = offs["w1"] + Din
    offs["whv"] = offs["w2"] + Dh
    offs["g1"] = offs["whv"] + Dh
    offs["g2"] = offs["g1"] + Dl
    offs["g3"] = offs["g2"] + Dh
    total_rows = offs["g3"] + Dh

    w_blob = jnp.zeros((total_rows, Wmax), jnp.float32)

    def put(blob, name, w):
        r = offs[name]
        return blob.at[r:r + w.shape[0], :w.shape[1]].set(w)

    # fused [z_mean | z_log_var] head, each padded to Dl lanes
    whv = jnp.zeros((hidden_dim, 2 * Dl), jnp.float32)
    whv = whv.at[:, :latent_dim].set(p["wm"])
    whv = whv.at[:, Dl:Dl + latent_dim].set(p["wv"])

    w_blob = put(w_blob, "w1", p["w1"])
    w_blob = put(w_blob, "w2", p["w2"])
    w_blob = put(w_blob, "whv", whv)
    w_blob = put(w_blob, "g1", p["g1"])
    w_blob = put(w_blob, "g2", p["g2"])
    w_blob = put(w_blob, "g3", p["g3"])

    b_blob = jnp.zeros((_SUBLANE, Wmax), jnp.float32)   # 8 rows = sublane aligned
    b_blob = b_blob.at[0, :hidden_dim].set(p["b1"][0])
    b_blob = b_blob.at[1, :hidden_dim].set(p["b2"][0])
    b_blob = b_blob.at[2, :latent_dim].set(p["bm"][0])
    b_blob = b_blob.at[2, Dl:Dl + latent_dim].set(p["bv"][0])
    b_blob = b_blob.at[3, :hidden_dim].set(p["gb2"][0])
    b_blob = b_blob.at[4, :input_dim].set(p["gb3"][0])

    return {
        "w": w_blob.astype(jnp.bfloat16),   # bf16 MXU operands, halves DMA bytes
        "b": b_blob,                        # biases stay f32 (added post-matmul)
        "meta": dict(Din=Din, Dh=Dh, Dl=Dl, offs=offs,
                     input_dim=input_dim, hidden_dim=hidden_dim,
                     latent_dim=latent_dim),
    }


# ---------------------------------------------------------------------------
# wrapper
# ---------------------------------------------------------------------------
def vae_forward(x, eps, packed, *, tile_b=128):
    """Full VAE forward in one pipelined Pallas call.

    tile_b: requested batch tile (M of every matmul).  128 works on all
    generations; 256 fills the v6e/v7x MXU for large batches.  The effective
    tile is clamped to round_up(batch, 8) so tiny batches don't pay for dead
    rows.  Resident weights + double-buffered activation tiles are a few
    hundred KiB -- far under v7x's 32 MiB scoped / 64 MiB physical VMEM.
    """
    meta = packed["meta"]
    Din, Dh, Dl = meta["Din"], meta["Dh"], meta["Dl"]
    offs = meta["offs"]
    input_dim, latent_dim = meta["input_dim"], meta["latent_dim"]

    batch = x.shape[0]
    tile_b = max(_SUBLANE, min(tile_b, _round_up(batch, _SUBLANE)))
    b_pad = _round_up(batch, tile_b)

    # zero-pad batch + feature dims to lane-aligned shapes (zeros are exact
    # no-ops through every layer, so results in the valid region are unchanged)
    x_p = jnp.zeros((b_pad, Din), jnp.bfloat16)
    x_p = x_p.at[:batch, :input_dim].set(x.astype(jnp.bfloat16))
    eps_p = jnp.zeros((b_pad, Dl), jnp.float32)
    eps_p = eps_p.at[:batch, :latent_dim].set(eps)

    w_blob, b_blob = packed["w"], packed["b"]
    grid = (b_pad // tile_b,)

    kernel = functools.partial(_vae_kernel, Din=Din, Dh=Dh, Dl=Dl, offs=offs)

    flops = 2 * b_pad * (Din * Dh + Dh * Dh + Dh * 2 * Dl
                         + Dl * Dh + Dh * Dh + Dh * Din)
    transcendentals = b_pad * Dl
    bytes_accessed = (x_p.size * 2 + eps_p.size * 4 + w_blob.size * 2
                      + b_blob.size * 4 + b_pad * Din * 4 + b_pad * 3 * Dl * 4)

    x_mean_p, lat_p = pl.pallas_call(
        kernel,
        out_shape=(
            jax.ShapeDtypeStruct((b_pad, Din), jnp.float32),
            jax.ShapeDtypeStruct((b_pad, 3 * Dl), jnp.float32),
        ),
        grid_spec=pltpu.PrefetchScalarGridSpec(
            num_scalar_prefetch=0,
            grid=grid,
            in_specs=[
                pl.BlockSpec((tile_b, Din), lambda i: (i, 0)),      # x tile
                pl.BlockSpec((tile_b, Dl), lambda i: (i, 0)),       # eps tile
                pl.BlockSpec(w_blob.shape, lambda i: (0, 0)),       # weights resident
                pl.BlockSpec(b_blob.shape, lambda i: (0, 0)),       # biases resident
            ],
            out_specs=[
                pl.BlockSpec((tile_b, Din), lambda i: (i, 0)),      # x_mean
                pl.BlockSpec((tile_b, 3 * Dl), lambda i: (i, 0)),   # z|z_mean|z_log_var
            ],
        ),
        compiler_params=pltpu.CompilerParams(
            dimension_semantics=("parallel",),   # shard batch tiles across TCs (v7x)
        ),
        cost_estimate=pl.CostEstimate(
            flops=flops,
            transcendentals=transcendentals,
            bytes_accessed=bytes_accessed,
        ),
    )(x_p, eps_p, w_blob, b_blob)

    x_mean = x_mean_p[:batch, :input_dim]
    z = lat_p[:batch, :latent_dim]
    z_mean = lat_p[:batch, Dl:Dl + latent_dim]
    z_log_var = lat_p[:batch, 2 * Dl:2 * Dl + latent_dim]
    return x_mean, z, z_mean, z_log_var


# ---------------------------------------------------------------------------
# parameters + pure-JAX reference
# ---------------------------------------------------------------------------
def init_params(key, input_dim, hidden_dim, latent_dim):
    """Deterministic synthetic parameters. Linear weights stored as (in, out)."""
    ks = jax.random.split(key, 16)

    def lin(k, fan_in, fan_out):
        scale = 1.0 / jnp.sqrt(fan_in)
        return jax.random.uniform(k, (fan_in, fan_out), jnp.float32, -scale, scale)

    def bias(k, fan_in, fan_out):
        scale = 1.0 / jnp.sqrt(fan_in)
        return jax.random.uniform(k, (1, fan_out), jnp.float32, -scale, scale)

    return {
        # q_z
        "w1": lin(ks[0], input_dim, hidden_dim),
        "b1": bias(ks[1], input_dim, hidden_dim),
        "w2": lin(ks[2], hidden_dim, hidden_dim),
        "b2": bias(ks[3], hidden_dim, hidden_dim),
        # heads
        "wm": lin(ks[4], hidden_dim, latent_dim),
        "bm": bias(ks[5], hidden_dim, latent_dim),
        "wv": lin(ks[6], hidden_dim, latent_dim),
        "bv": bias(ks[7], hidden_dim, latent_dim),
        # generator
        "g1": lin(ks[8], latent_dim, hidden_dim),          # bias=False
        "g2": lin(ks[9], hidden_dim, hidden_dim),
        "gb2": bias(ks[10], hidden_dim, hidden_dim),
        "g3": lin(ks[11], hidden_dim, input_dim),
        "gb3": bias(ks[12], hidden_dim, input_dim),
    }


def vae_forward_ref(x, eps, p):
    """Pure-JAX reference with the same bf16-operand / f32-accum matmuls."""
    bf16 = jnp.bfloat16

    def mm(a, w):
        return jnp.dot(a.astype(bf16), w.astype(bf16),
                       preferred_element_type=jnp.float32)

    h = jnp.maximum(mm(x, p["w1"]) + p["b1"], 0.0)
    h = jnp.maximum(mm(h, p["w2"]) + p["b2"], 0.0)
    z_mean = mm(h, p["wm"]) + p["bm"]
    z_log_var = mm(h, p["wv"]) + p["bv"]
    z = z_mean + eps * jnp.exp(0.5 * z_log_var)
    g = jnp.maximum(mm(z, p["g1"]), 0.0)
    g = jnp.maximum(mm(g, p["g2"]) + p["gb2"], 0.0)
    x_mean = mm(g, p["g3"]) + p["gb3"]
    return x_mean, z, z_mean, z_log_var


if __name__ == "__main__":
    # TODO(synk): torch.randn_like noise, Dropout(p=0), and the loss / KLD
    # branches are outside the forward pass; eps is sampled host-side instead.
    batch, input_dim, hidden_dim, latent_dim = 8, 16, 32, 8

    key = jax.random.PRNGKey(0)
    k_x, k_eps, k_p = jax.random.split(key, 3)

    x = jax.random.normal(k_x, (batch, input_dim), jnp.float32)
    eps = jax.random.normal(k_eps, (batch, latent_dim), jnp.float32)

    params = init_params(k_p, input_dim, hidden_dim, latent_dim)
    packed = pack_params(params, input_dim, hidden_dim, latent_dim)

    x_mean, z, z_mean, z_log_var = jax.block_until_ready(
        vae_forward(x, eps, packed)
    )

    # correctness check against pure-JAX reference (same mixed precision)
    r_xm, r_z, r_zm, r_zlv = vae_forward_ref(x, eps, params)
    assert jnp.allclose(x_mean, r_xm, atol=1e-4, rtol=1e-4)
    assert jnp.allclose(z, r_z, atol=1e-4, rtol=1e-4)
    assert jnp.allclose(z_mean, r_zm, atol=1e-4, rtol=1e-4)
    assert jnp.allclose(z_log_var, r_zlv, atol=1e-4, rtol=1e-4)

    print("KERNEL_OK")
</pallas_src>

<mosaic_0001>
module attributes {stable_mosaic.version = 11 : i64} {
  func.func @_vae_kernel(%arg0: i32, %arg1: memref<8x128xbf16, #tpu.memory_space<vmem>>, %arg2: memref<8x128xf32, #tpu.memory_space<vmem>>, %arg3: memref<768x256xbf16, #tpu.memory_space<vmem>>, %arg4: memref<8x256xf32, #tpu.memory_space<vmem>>, %arg5: memref<8x128xf32, #tpu.memory_space<vmem>>, %arg6: memref<8x384xf32, #tpu.memory_space<vmem>>) attributes {dimension_semantics = [#tpu.dimension_semantics<parallel>], iteration_bounds = array<i64: 1>, scalar_prefetch = 0 : i64, scratch_operands = 0 : i64, tpu.core_type = #tpu.core_type<tc>, window_params = [{transform_indices = @transform_0, window_bounds = array<i64: 8, 128>}, {transform_indices = @transform_1, window_bounds = array<i64: 8, 128>}, {pipeline_mode = #tpu.pipeline_mode<synchronous>, transform_indices = @transform_2, window_bounds = array<i64: 768, 256>}, {pipeline_mode = #tpu.pipeline_mode<synchronous>, transform_indices = @transform_3, window_bounds = array<i64: 8, 256>}, {transform_indices = @transform_4, window_bounds = array<i64: 8, 128>}, {transform_indices = @transform_5, window_bounds = array<i64: 8, 384>}]} {
    %c0 = arith.constant 0 : index
    %c0_0 = arith.constant 0 : index
    %0 = vector.load %arg1[%c0, %c0_0] : memref<8x128xbf16, #tpu.memory_space<vmem>>, vector<8x128xbf16>
    %c0_1 = arith.constant 0 : index
    %c0_2 = arith.constant 0 : index
    %1 = vector.load %arg2[%c0_1, %c0_2] : memref<8x128xf32, #tpu.memory_space<vmem>>, vector<8x128xf32>
    %c0_3 = arith.constant 0 : index
    %c0_4 = arith.constant 0 : index
    %2 = vector.load %arg3[%c0_3, %c0_4] : memref<768x256xbf16, #tpu.memory_space<vmem>>, vector<128x128xbf16>
    %cst = arith.constant dense<0.000000e+00> : vector<8x128xf32>
    %3 = tpu.matmul %0, %2, %cst {dimension_numbers = #tpu.dot_dimension_numbers<[1], [0], [0], [1], [0, 0, 1, 1], [], []>} : vector<8x128xbf16>, vector<128x128xbf16>, vector<8x128xf32> -> vector<8x128xf32>
    %c0_5 = arith.constant 0 : index
    %c0_6 = arith.constant 0 : index
    %4 = vector.load %arg4[%c0_5, %c0_6] : memref<8x256xf32, #tpu.memory_space<vmem>>, vector<1x128xf32>
    %5 = vector.broadcast %4 : vector<1x128xf32> to vector<8x128xf32>
    %6 = arith.addf %3, %5 : vector<8x128xf32>
    %cst_7 = arith.constant 0.000000e+00 : f32
    %7 = vector.broadcast %cst_7 : f32 to vector<8x128xf32>
    %8 = arith.maximumf %6, %7 : vector<8x128xf32>
    %9 = arith.truncf %8 : vector<8x128xf32> to vector<8x128xbf16>
    %c128 = arith.constant 128 : index
    %c0_8 = arith.constant 0 : index
    %10 = vector.load %arg3[%c128, %c0_8] : memref<768x256xbf16, #tpu.memory_space<vmem>>, vector<128x128xbf16>
    %cst_9 = arith.constant dense<0.000000e+00> : vector<8x128xf32>
    %11 = tpu.matmul %9, %10, %cst_9 {dimension_numbers = #tpu.dot_dimension_numbers<[1], [0], [0], [1], [0, 0, 1, 1], [], []>} : vector<8x128xbf16>, vector<128x128xbf16>, vector<8x128xf32> -> vector<8x128xf32>
    %c1 = arith.constant 1 : index
    %c0_10 = arith.constant 0 : index
    %12 = vector.load %arg4[%c1, %c0_10] : memref<8x256xf32, #tpu.memory_space<vmem>>, vector<1x128xf32>
    %13 = vector.broadcast %12 : vector<1x128xf32> to vector<8x128xf32>
    %14 = arith.addf %11, %13 : vector<8x128xf32>
    %cst_11 = arith.constant 0.000000e+00 : f32
    %15 = vector.broadcast %cst_11 : f32 to vector<8x128xf32>
    %16 = arith.maximumf %14, %15 : vector<8x128xf32>
    %17 = arith.truncf %16 : vector<8x128xf32> to vector<8x128xbf16>
    %c256 = arith.constant 256 : index
    %c0_12 = arith.constant 0 : index
    %18 = vector.load %arg3[%c256, %c0_12] : memref<768x256xbf16, #tpu.memory_space<vmem>>, vector<128x256xbf16>
    %cst_13 = arith.constant dense<0.000000e+00> : vector<8x256xf32>
    %19 = tpu.matmul %17, %18, %cst_13 {dimension_numbers = #tpu.dot_dimension_numbers<[1], [0], [0], [1], [0, 0, 1, 1], [], []>} : vector<8x128xbf16>, vector<128x256xbf16>, vector<8x256xf32> -> vector<8x256xf32>
    %c2 = arith.constant 2 : index
    %c0_14 = arith.constant 0 : index
    %20 = vector.load %arg4[%c2, %c0_14] : memref<8x256xf32, #tpu.memory_space<vmem>>, vector<1x256xf32>
    %21 = vector.broadcast %20 : vector<1x256xf32> to vector<8x256xf32>
    %22 = arith.addf %19, %21 : vector<8x256xf32>
    %23 = vector.extract_strided_slice %22 {offsets = [0, 0], sizes = [8, 128], strides = [1, 1]} : vector<8x256xf32> to vector<8x128xf32>
    %24 = vector.extract_strided_slice %22 {offsets = [0, 128], sizes = [8, 128], strides = [1, 1]} : vector<8x256xf32> to vector<8x128xf32>
    %cst_15 = arith.constant 5.000000e-01 : f32
    %25 = vector.broadcast %cst_15 : f32 to vector<8x128xf32>
    %26 = arith.mulf %25, %24 : vector<8x128xf32>
    %27 = math.exp %26 : vector<8x128xf32>
    %28 = arith.mulf %1, %27 : vector<8x128xf32>
    %29 = arith.addf %23, %28 : vector<8x128xf32>
    %30 = arith.truncf %29 : vector<8x128xf32> to vector<8x128xbf16>
    %c384 = arith.constant 384 : index
    %c0_16 = arith.constant 0 : index
    %31 = vector.load %arg3[%c384, %c0_16] : memref<768x256xbf16, #tpu.memory_space<vmem>>, vector<128x128xbf16>
    %cst_17 = arith.constant dense<0.000000e+00> : vector<8x128xf32>
    %32 = tpu.matmul %30, %31, %cst_17 {dimension_numbers = #tpu.dot_dimension_numbers<[1], [0], [0], [1], [0, 0, 1, 1], [], []>} : vector<8x128xbf16>, vector<128x128xbf16>, vector<8x128xf32> -> vector<8x128xf32>
    %cst_18 = arith.constant 0.000000e+00 : f32
    %33 = vector.broadcast %cst_18 : f32 to vector<8x128xf32>
    %34 = arith.maximumf %32, %33 : vector<8x128xf32>
    %35 = arith.truncf %34 : vector<8x128xf32> to vector<8x128xbf16>
    %c512 = arith.constant 512 : index
    %c0_19 = arith.constant 0 : index
    %36 = vector.load %arg3[%c512, %c0_19] : memref<768x256xbf16, #tpu.memory_space<vmem>>, vector<128x128xbf16>
    %cst_20 = arith.constant dense<0.000000e+00> : vector<8x128xf32>
    %37 = tpu.matmul %35, %36, %cst_20 {dimension_numbers = #tpu.dot_dimension_numbers<[1], [0], [0], [1], [0, 0, 1, 1], [], []>} : vector<8x128xbf16>, vector<128x128xbf16>, vector<8x128xf32> -> vector<8x128xf32>
    %c3 = arith.constant 3 : index
    %c0_21 = arith.constant 0 : index
    %38 = vector.load %arg4[%c3, %c0_21] : memref<8x256xf32, #tpu.memory_space<vmem>>, vector<1x128xf32>
    %39 = vector.broadcast %38 : vector<1x128xf32> to vector<8x128xf32>
    %40 = arith.addf %37, %39 : vector<8x128xf32>
    %cst_22 = arith.constant 0.000000e+00 : f32
    %41 = vector.broadcast %cst_22 : f32 to vector<8x128xf32>
    %42 = arith.maximumf %40, %41 : vector<8x128xf32>
    %43 = arith.truncf %42 : vector<8x128xf32> to vector<8x128xbf16>
    %c640 = arith.constant 640 : index
    %c0_23 = arith.constant 0 : index
    %44 = vector.load %arg3[%c640, %c0_23] : memref<768x256xbf16, #tpu.memory_space<vmem>>, vector<128x128xbf16>
    %cst_24 = arith.constant dense<0.000000e+00> : vector<8x128xf32>
    %45 = tpu.matmul %43, %44, %cst_24 {dimension_numbers = #tpu.dot_dimension_numbers<[1], [0], [0], [1], [0, 0, 1, 1], [], []>} : vector<8x128xbf16>, vector<128x128xbf16>, vector<8x128xf32> -> vector<8x128xf32>
    %c4 = arith.constant 4 : index
    %c0_25 = arith.constant 0 : index
    %46 = vector.load %arg4[%c4, %c0_25] : memref<8x256xf32, #tpu.memory_space<vmem>>, vector<1x128xf32>
    %47 = vector.broadcast %46 : vector<1x128xf32> to vector<8x128xf32>
    %48 = arith.addf %45, %47 : vector<8x128xf32>
    %c0_26 = arith.constant 0 : index
    %c0_27 = arith.constant 0 : index
    %49 = vector.load %arg5[%c0_26, %c0_27] : memref<8x128xf32, #tpu.memory_space<vmem>>, vector<8x128xf32>
    tpu.vector_store %arg5[%c0_26, %c0_27], %48 {strides = array<i32>} : memref<8x128xf32, #tpu.memory_space<vmem>>, vector<8x128xf32>,
    %50 = tpu.concatenate %29, %23, %24 in 1 : vector<8x128xf32>, vector<8x128xf32>, vector<8x128xf32> -> vector<8x384xf32>
    %c0_28 = arith.constant 0 : index
    %c0_29 = arith.constant 0 : index
    %51 = vector.load %arg6[%c0_28, %c0_29] : memref<8x384xf32, #tpu.memory_space<vmem>>, vector<8x384xf32>
    tpu.vector_store %arg6[%c0_28, %c0_29], %50 {strides = array<i32>} : memref<8x384xf32, #tpu.memory_space<vmem>>, vector<8x384xf32>,
    return
  }
  func.func @transform_0(%arg0: i32) -> (i32, i32) {
    %c0_i32 = arith.constant 0 : i32
    %c0_i32_0 = arith.constant 0 : i32
    return %arg0, %c0_i32 : i32, i32
  }
  func.func @transform_1(%arg0: i32) -> (i32, i32) {
    %c0_i32 = arith.constant 0 : i32
    %c0_i32_0 = arith.constant 0 : i32
    return %arg0, %c0_i32 : i32, i32
  }
  func.func @transform_2(%arg0: i32) -> (i32, i32) {
    %c0_i32 = arith.constant 0 : i32
    %c0_i32_0 = arith.constant 0 : i32
    %c0_i32_1 = arith.constant 0 : i32
    return %c0_i32, %c0_i32_0 : i32, i32
  }
  func.func @transform_3(%arg0: i32) -> (i32, i32) {
    %c0_i32 = arith.constant 0 : i32
    %c0_i32_0 = arith.constant 0 : i32
    %c0_i32_1 = arith.constant 0 : i32
    return %c0_i32, %c0_i32_0 : i32, i32
  }
  func.func @transform_4(%arg0: i32) -> (i32, i32) {
    %c0_i32 = arith.constant 0 : i32
    %c0_i32_0 = arith.constant 0 : i32
    return %arg0, %c0_i32 : i32, i32
  }
  func.func @transform_5(%arg0: i32) -> (i32, i32) {
    %c0_i32 = arith.constant 0 : i32
    %c0_i32_0 = arith.constant 0 : i32
    return %arg0, %c0_i32 : i32, i32
  }
}

</mosaic_0001>

<bundles_post_ra>
// kernel: tpu_custom_call.1
= control target key start
LH: loop header
LB: loop body
LE: loop exit
PB: predicated region body
PF: predicated region fallthrough
CT: control target
= control target key end

     0   :  { %11 = vsyncpa [#allocation3], 0  ;;  %s1313_s0 = inlined_call_operand.hbm [shape: bf16[8,128], index: 0, kind: input, shape index: {}]   ;;  %s1314_s1 = inlined_call_operand.hbm [shape: f32[8,128], index: 1, kind: input, shape index: {}]   ;;  %s1315_s2 = inlined_call_operand.hbm [shape: bf16[768,256], index: 2, kind: input, shape index: {}]   ;;  %s1316_s3 = inlined_call_operand.hbm [shape: f32[8,256], index: 3, kind: input, shape index: {}]   ;;  %s1317_s4 = inlined_call_operand.hbm [shape: f32[8,128], index: 4, kind: output, shape index: {0}]   ;;  %s1318_s5 = inlined_call_operand.hbm [shape: f32[8,384], index: 5, kind: output, shape index: {1}]  }
   0x1   :  { %12 = vsyncpa [#allocation6], 0 }
   0x2   :  { %13 = vsyncpa [#allocation9], 0 }
   0x3   :  { %14 = vsyncpa [#allocation4], 0 }
   0x4   :  { %15 = vsyncpa [#allocation12], 0  ;;  %s1204_s18 = smov [#allocation5]   ;;  %s1205_s20 = smov [#allocation2]  }
   0x5   :  { %s32_s19 = sshll.u32 %s1204_s18, 4  ;;  %s22_s21 = sshll.u32 %s1205_s20, 4  ;;  %s33_s19 = int_to_ptr.vmem [resolvable:$true] %s32_s19  ;;  %s23_s21 = int_to_ptr.vmem [resolvable:$true] %s22_s21 }
   0x6   :  { %s1082_s22 = scalar_lea.vmem %s33_s19, 128  ;;  %p1087_p1 = scmp.lt.s32.totalorder %s33_s19, %s33_s19 }
   0x7   :  { %p1083_p0 = scmp.ne.s32.totalorder %s33_s19, %s1082_s22  ;;  %p1088_p2 = scmp.lt.s32.totalorder %s1082_s22, %s1082_s22 }
   0x9   :  { %p1089_p3 = por %p1088_p2, %p1087_p1 }
   0xb   :  { %p1090_p4 = pnand %p1089_p3, %p1083_p0 }
   0xd   :  { %1093 = shalt.err (!%p1090_p4)
}
   0xe   :  { %35 = dma.hbm_to_vmem [thread:$0]  %s1314_s1, 128, %s33_s19, [#allocation6]  }
   0xf   :  { %s1102_s25 = scalar_lea.vmem %s23_s21, 64  ;;  %p1107_p6 = scmp.lt.s32.totalorder %s23_s21, %s23_s21 }
  0x10   :  { %p1103_p5 = scmp.ne.s32.totalorder %s23_s21, %s1102_s25  ;;  %p1108_p7 = scmp.lt.s32.totalorder %s1102_s25, %s1102_s25 }
  0x12   :  { %p1109_p8 = por %p1108_p7, %p1107_p6 }
  0x14   :  { %p1110_p9 = pnand %p1109_p8, %p1103_p5 }
  0x16   :  { %1113 = shalt.err (!%p1110_p9)
}
  0x17   :  { %25 = dma.hbm_to_vmem [thread:$0]  %s1313_s0, 64, %s23_s21, [#allocation3]  }
  0x18   :  { %s1206_s28 = smov [#allocation7]  }
  0x19   :  { %s41_s29 = sshll.u32 %s1206_s28, 4  ;;  %s42_s29 = int_to_ptr.vmem [resolvable:$true] %s41_s29 }
  0x1a   :  { %s1122_s30 = scalar_lea.vmem %s42_s29, 12288  ;;  %p1127_p11 = scmp.lt.s32.totalorder %s42_s29, %s42_s29 }
  0x1b   :  { %p1123_p10 = scmp.ne.s32.totalorder %s42_s29, %s1122_s30  ;;  %p1128_p12 = scmp.lt.s32.totalorder %s1122_s30, %s1122_s30 }
  0x1d   :  { %p1129_p13 = por %p1128_p12, %p1127_p11 }
  0x1f   :  { %p1130_p0 = pnand %p1129_p13, %p1123_p10 }
  0x21   :  { %1133 = shalt.err (!%p1130_p0)
}
  0x22   :  { %s1207_s1 = smov 128   ;;  %s1208_s6 = smov 8  }
  0x23   :  { %47 = dma.hbm_to_vmem [thread:$0]  %s1315_s2, 12288, %s42_s29, [#allocation6], %s1207_s1, %s1207_s1, %s1208_s6  }
  0x24   :  { %s1209_s9 = smov [#allocation8]  }
  0x25   :  { %s54_s10 = sshll.u32 %s1209_s9, 4  ;;  %s55_s10 = int_to_ptr.vmem [resolvable:$true] %s54_s10 }
  0x26   :  { %s1142_s0 = scalar_lea.vmem %s55_s10, 256  ;;  %p1147_p2 = scmp.lt.s32.totalorder %s55_s10, %s55_s10 }
  0x27   :  { %p1143_p1 = scmp.ne.s32.totalorder %s55_s10, %s1142_s0  ;;  %p1148_p3 = scmp.lt.s32.totalorder %s1142_s0, %s1142_s0 }
  0x29   :  { %p1149_p4 = por %p1148_p3, %p1147_p2 }
  0x2b   :  { %p1150_p5 = pnand %p1149_p4, %p1143_p1 }
  0x2d   :  { %1153 = shalt.err (!%p1150_p5)
}
  0x2e   :  { %57 = dma.hbm_to_vmem [thread:$0]  %s1316_s3, 256, %s55_s10, [#allocation9]  }
  0x2f   :  { %1194 = dma.done.wait [#allocation3], 64  }
  0x30   :  { %1195 = vsyncadd [#allocation3], 4294967232 }
  0x31   :  { %1196 = dma.done.wait [#allocation6], 12416  }
  0x32   :  { %1197 = vsyncadd [#allocation6], 4294954880 }
  0x33   :  { %1198 = dma.done.wait [#allocation9], 256  }
  0x34   :  { %1199 = vsyncadd [#allocation9], 4294967040  ;;  %v1210_v0 = vmov 0.0   ;;  %vm1211_vm0 = vmmov 0   ;;  %v1008_v1 = vld [vmem:[#allocation7 + $0x70] ss:$8 sps:$4 sm:$0xff]  }
  0x35   :  { %897 = vmatprep.subr.bf16.mxu0 %v1210_v0  ;;  %913 = vmatprep.mubr.msk.bf16.mxu0 %vm1211_vm0, %v1210_v0  ;;  %v1009_v2 = vld [vmem:[#allocation7 + $0x60] ss:$8 sps:$4 sm:$0xff]   ;;  %v1010_v3 = vld [vmem:[#allocation7 + $0x50] ss:$8 sps:$4 sm:$0xff]   ;;  %v71_v15 = vld [vmem:[#allocation2] sm:$0xf] }
  0x36   :  { %917 = vmatprep.subr.bf16.mxu1 %v1210_v0  ;;  %933 = vmatprep.mubr.msk.bf16.mxu1 %vm1211_vm0, %v1210_v0  ;;  %v1016_v4 = vld [vmem:[#allocation7 + $0xf0] ss:$8 sps:$4 sm:$0xff]   ;;  %v1011_v5 = vld [vmem:[#allocation7 + $0x40] ss:$8 sps:$4 sm:$0xff]   ;;  %v1026_v19 = vld [vmem:[#allocation7 + $0x174] ss:$8 sps:$4 sm:$0xff]  }
  0x37   :  { %898 = vmatpush3.bf16.msra.mxu0 %v1008_v1  ;;  %918 = vmatpush3.bf16.msra.mxu1 %v1016_v4  ;;  %v1017_v6 = vld [vmem:[#allocation7 + $0xe0] ss:$8 sps:$4 sm:$0xff]   ;;  %v1012_v7 = vld [vmem:[#allocation7 + $0x30] ss:$8 sps:$4 sm:$0xff]   ;;  %v1029_v20 = vld [vmem:[#allocation7 + $0x164] ss:$8 sps:$4 sm:$0xff]  }
  0x38   :  { %899 = vmatprep.subr.bf16.mxu0 %v1210_v0  ;;  %919 = vmatprep.subr.bf16.mxu1 %v1210_v0  ;;  %v1018_v8 = vld [vmem:[#allocation7 + $0xd0] ss:$8 sps:$4 sm:$0xff]   ;;  %v1013_v9 = vld [vmem:[#allocation7 + $0x20] ss:$8 sps:$4 sm:$0xff]   ;;  %v1032_v22 = vld [vmem:[#allocation7 + $0x154] ss:$8 sps:$4 sm:$0xff]  }
  0x39   :  { %v1019_v10 = vld [vmem:[#allocation7 + $0xc0] ss:$8 sps:$4 sm:$0xff]   ;;  %v1014_v11 = vld [vmem:[#allocation7 + $0x10] ss:$8 sps:$4 sm:$0xff]   ;;  %v1035_v24 = vld [vmem:[#allocation7 + $0x144] ss:$8 sps:$4 sm:$0xff]  }
  0x3a   :  { %v1020_v12 = vld [vmem:[#allocation7 + $0xb0] ss:$8 sps:$4 sm:$0xff]   ;;  %v1015_v13 = vld [vmem:[#allocation7] ss:$8 sps:$4 sm:$0xff]   ;;  %v1038_v26 = vld [vmem:[#allocation7 + $0x134] ss:$8 sps:$4 sm:$0xff]  }
  0x3b   :  { %900 = vmatpush3.bf16.msra.mxu0 %v1009_v2  ;;  %920 = vmatpush3.bf16.msra.mxu1 %v1017_v6  ;;  %v1021_v14 = vld [vmem:[#allocation7 + $0xa0] ss:$8 sps:$4 sm:$0xff]   ;;  %v1022_v16 = vld [vmem:[#allocation7 + $0x90] ss:$8 sps:$4 sm:$0xff]   ;;  %v1041_v28 = vld [vmem:[#allocation7 + $0x124] ss:$8 sps:$4 sm:$0xff]  }
  0x3c   :  { %901 = vmatprep.subr.bf16.mxu0 %v1210_v0  ;;  %921 = vmatprep.subr.bf16.mxu1 %v1210_v0  ;;  %v1023_v17 = vld [vmem:[#allocation7 + $0x80] ss:$8 sps:$4 sm:$0xff]   ;;  %v1024_v18 = vld [vmem:[#allocation7 + $0x170] ss:$8 sps:$4 sm:$0xff]   ;;  %v1044_v30 = vld [vmem:[#allocation7 + $0x114] ss:$8 sps:$4 sm:$0xff]  }
  0x3d   :  { %v1027_v21 = vld [vmem:[#allocation7 + $0x160] ss:$8 sps:$4 sm:$0xff]   ;;  %v1030_v23 = vld [vmem:[#allocation7 + $0x150] ss:$8 sps:$4 sm:$0xff]   ;;  %v1047_v40 = vld [vmem:[#allocation7 + $0x104] ss:$8 sps:$4 sm:$0xff]  }
  0x3e   :  { %v1033_v25 = vld [vmem:[#allocation7 + $0x140] ss:$8 sps:$4 sm:$0xff]   ;;  %v1036_v27 = vld [vmem:[#allocation7 + $0x130] ss:$8 sps:$4 sm:$0xff]   ;;  %v1212_v42 = vmov 0   ;;  %s1213_s2 = smov [#allocation11]  }
  0x3f   :  { %902 = vmatpush3.bf16.msra.mxu0 %v1010_v3  ;;  %922 = vmatpush3.bf16.msra.mxu1 %v1018_v8  ;;  %v1039_v29 = vld [vmem:[#allocation7 + $0x120] ss:$8 sps:$4 sm:$0xff]   ;;  %v1042_v31 = vld [vmem:[#allocation7 + $0x110] ss:$8 sps:$4 sm:$0xff]   ;;  %v306_v3 = vlaneseq  ;;  %s781_s3 = sshll.u32 %s1213_s2, 4  ;;  %s782_s3 = int_to_ptr.vmem [resolvable:$true] %s781_s3 }
  0x40   :  { %903 = vmatprep.subr.bf16.mxu0 %v1210_v0  ;;  %923 = vmatprep.subr.bf16.mxu1 %v1210_v0  ;;  %v89_v32 = vld [vmem:[#allocation8] ss:$0 sm:$0xff]  ;;  %v1048_v43 = vld [vmem:[#allocation7 + $0x1f0] ss:$8 sps:$4 sm:$0xff]   ;;  %v196_v44 = vld [vmem:[#allocation8 + $0x1] ss:$0 sm:$0xff]  ;;  %p1159_p7 = scmp.lt.s32.totalorder %s782_s3, %s782_s3 }
  0x41   :  { %v1045_v41 = vld [vmem:[#allocation7 + $0x100] ss:$8 sps:$4 sm:$0xff]   ;;  %v1050_v53 = vld [vmem:[#allocation7 + $0x1d0] ss:$8 sps:$4 sm:$0xff]   ;;  %v307_v4 = vshrl.u32 %v306_v3, 7  ;;  %s1154_s13 = scalar_lea.vmem %s782_s3, 384 }
  0x42   :  { %v1049_v52 = vld [vmem:[#allocation7 + $0x1e0] ss:$8 sps:$4 sm:$0xff]   ;;  %v1052_v55 = vld [vmem:[#allocation7 + $0x1b0] ss:$8 sps:$4 sm:$0xff]   ;;  %p1155_p6 = scmp.ne.s32.totalorder %s782_s3, %s1154_s13  ;;  %p1160_p8 = scmp.lt.s32.totalorder %s1154_s13, %s1154_s13 }
  0x43   :  { %904 = vmatpush3.bf16.msra.mxu0 %v1011_v5  ;;  %924 = vmatpush3.bf16.msra.mxu1 %v1019_v10  ;;  %v1051_v54 = vld [vmem:[#allocation7 + $0x1c0] ss:$8 sps:$4 sm:$0xff]   ;;  %v1054_v57 = vld [vmem:[#allocation7 + $0x190] ss:$8 sps:$4 sm:$0xff]   ;;  %v308_v5 = vsub.s32 0, %v307_v4 }
  0x44   :  { %905 = vmatprep.subr.bf16.mxu0 %v1210_v0  ;;  %925 = vmatprep.subr.bf16.mxu1 %v1210_v0  ;;  %v1053_v56 = vld [vmem:[#allocation7 + $0x1a0] ss:$8 sps:$4 sm:$0xff]   ;;  %v1056_v59 = vld [vmem:[#allocation7 + $0x270] ss:$8 sps:$4 sm:$0xff]   ;;  %p1161_p9 = por %p1160_p8, %p1159_p7 }
  0x45   :  { %v1055_v58 = vld [vmem:[#allocation7 + $0x180] ss:$8 sps:$4 sm:$0xff]   ;;  %v1058_v61 = vld [vmem:[#allocation7 + $0x250] ss:$8 sps:$4 sm:$0xff]  }
  0x46   :  { %v1057_v60 = vld [vmem:[#allocation7 + $0x260] ss:$8 sps:$4 sm:$0xff]   ;;  %v1060_v63 = vld [vmem:[#allocation7 + $0x230] ss:$8 sps:$4 sm:$0xff]   ;;  %p1162_p10 = pnand %p1161_p9, %p1155_p6 }
  0x47   :  { %906 = vmatpush3.bf16.msra.mxu0 %v1012_v7  ;;  %926 = vmatpush3.bf16.msra.mxu1 %v1020_v12  ;;  %v1059_v62 = vld [vmem:[#allocation7 + $0x240] ss:$8 sps:$4 sm:$0xff]   ;;  %v1062_v2 = vld [vmem:[#allocation7 + $0x210] ss:$8 sps:$4 sm:$0xff]   ;;  %v312_v7 = vsub.s32 1, %v307_v4 }
  0x48   :  { %907 = vmatprep.subr.bf16.mxu0 %v1210_v0  ;;  %927 = vmatprep.subr.bf16.mxu1 %v1210_v0  ;;  %v1061_v1 = vld [vmem:[#allocation7 + $0x220] ss:$8 sps:$4 sm:$0xff]  }
  0x49   :  { %v304_v6 = vld [vmem:[#allocation8 + $0x2] ss:$8 sm:$0x3] }
  0x4a   :  { %v309_v8 = vrot.slane %v304_v6, %v308_v5 }
  0x4b   :  { %908 = vmatpush3.bf16.msra.mxu0 %v1013_v9  ;;  %928 = vmatpush3.bf16.msra.mxu1 %v1021_v14  ;;  %v313_v9 = vrot.slane %v304_v6, %v312_v7 }
  0x4c   :  { %909 = vmatprep.subr.bf16.mxu0 %v1210_v0  ;;  %929 = vmatprep.subr.bf16.mxu1 %v1210_v0 }
  0x4f   :  { %910 = vmatpush3.bf16.msra.mxu0 %v1014_v11  ;;  %930 = vmatpush3.bf16.msra.mxu1 %v1022_v16 }
  0x50   :  { %911 = vmatprep.subr.bf16.mxu0 %v1210_v0  ;;  %931 = vmatprep.subr.bf16.mxu1 %v1210_v0 }
  0x53   :  { %912 = vmatpush3.bf16.msra.mxu0 %v1015_v13  ;;  %932 = vmatpush3.bf16.msra.mxu1 %v1023_v17 }
  0x54   :  { %937 = vmatprep.subr.bf16.mxu1 %v1210_v0  ;;  %396 = vmatprep.subr.bf16.mxu0 %v1026_v19 }
  0x56   :  { %914 = vmatmul.mubr.bf16.vlgmr.msra.gmra.mxu0 %v71_v15 }
  0x57   :  { %397 = vmatpush1.bf16.msra.mxu0 %v1024_v18  ;;  %428 = vmatprep.mubr.bf16.mxu0 %v1212_v42  ;;  %v72_v18 = vld [vmem:[#allocation5] sm:$0xff] }
  0x58   :  { %398 = vmatprep.subr.bf16.mxu0 %v1029_v20 }
  0x5b   :  { %399 = vmatpush1.bf16.msra.mxu0 %v1027_v21 }
  0x5c   :  { %400 = vmatprep.subr.bf16.mxu0 %v1032_v22 }
  0x5f   :  { %401 = vmatpush1.bf16.msra.mxu0 %v1030_v23  ;;  %v1063_v23 = vld [vmem:[#allocation7 + $0x200] ss:$8 sps:$4 sm:$0xff]  }
  0x60   :  { %402 = vmatprep.subr.bf16.mxu0 %v1035_v24  ;;  %v1064_v24 = vld [vmem:[#allocation7 + $0x2f0] ss:$8 sps:$4 sm:$0xff]  }
  0x63   :  { %403 = vmatpush1.bf16.msra.mxu0 %v1033_v25  ;;  %v1065_v25 = vld [vmem:[#allocation7 + $0x2e0] ss:$8 sps:$4 sm:$0xff]  }
  0x64   :  { %404 = vmatprep.subr.bf16.mxu0 %v1038_v26  ;;  %v1066_v26 = vld [vmem:[#allocation7 + $0x2d0] ss:$8 sps:$4 sm:$0xff]  }
  0x67   :  { %405 = vmatpush1.bf16.msra.mxu0 %v1036_v27  ;;  %v1067_v27 = vld [vmem:[#allocation7 + $0x2c0] ss:$8 sps:$4 sm:$0xff]  }
  0x68   :  { %406 = vmatprep.subr.bf16.mxu0 %v1041_v28  ;;  %v1068_v28 = vld [vmem:[#allocation7 + $0x2b0] ss:$8 sps:$4 sm:$0xff]  }
  0x6b   :  { %407 = vmatpush1.bf16.msra.mxu0 %v1039_v29  ;;  %v1069_v29 = vld [vmem:[#allocation7 + $0x2a0] ss:$8 sps:$4 sm:$0xff]  }
  0x6c   :  { %408 = vmatprep.subr.bf16.mxu0 %v1044_v30 }
  0x6f   :  { %409 = vmatpush1.bf16.msra.mxu0 %v1042_v31 }
  0x70   :  { %410 = vmatprep.subr.bf16.mxu0 %v1047_v40 }
  0x73   :  { %411 = vmatpush1.bf16.msra.mxu0 %v1045_v41 }
  0x74   :  { %957 = vmatprep.subr.bf16.mxu0 %v1210_v0 }
 0x116   :  { %v172_v33 = vpop.f32.mrf.mxu0 }
 0x117   :  { %v173_v34 = vadd.f32 %v172_v33, %v89_v32 }
 0x118   :  { %v915_v35 = vpop.f32.mrf.mxu0 }
 0x119   :  { %v178_v36 = vmax.f32 %v173_v34, 0.0 }
 0x11a   :  { %v175_v37 = vpop.f32.mrf.mxu0 }
 0x11b   :  { %v179_v38 = vpack.c.bf16 %v178_v36, %v178_v36  ;;  %v1070_v36 = vld [vmem:[#allocation7 + $0x290] ss:$8 sps:$4 sm:$0xff]   ;;  %v1071_v37 = vld [vmem:[#allocation7 + $0x280] ss:$8 sps:$4 sm:$0xff]  }
 0x11c   :  { %v916_v39 = vpop.f32.mrf.mxu0 }
 0x11d   :  { %934 = vmatmul.mubr.bf16.vlgmr.msra.gmra.mxu1 %v179_v38  ;;  %v565_v38 = vld [vmem:[#allocation8 + $0x3] ss:$0 sm:$0xff] }
 0x11e   :  { %953 = vmatprep.mubr.msk.bf16.mxu1 %vm1211_vm0, %v1210_v0  ;;  %938 = vmatpush3.bf16.msra.mxu1 %v1048_v43 }
 0x11f   :  { %939 = vmatprep.subr.bf16.mxu1 %v1210_v0 }
 0x122   :  { %940 = vmatpush3.bf16.msra.mxu1 %v1049_v52 }
 0x123   :  { %941 = vmatprep.subr.bf16.mxu1 %v1210_v0 }
 0x126   :  { %942 = vmatpush3.bf16.msra.mxu1 %v1050_v53 }
 0x127   :  { %943 = vmatprep.subr.bf16.mxu1 %v1210_v0 }
 0x12a   :  { %944 = vmatpush3.bf16.msra.mxu1 %v1051_v54 }
 0x12b   :  { %945 = vmatprep.subr.bf16.mxu1 %v1210_v0 }
 0x12e   :  { %946 = vmatpush3.bf16.msra.mxu1 %v1052_v55 }
 0x12f   :  { %947 = vmatprep.subr.bf16.mxu1 %v1210_v0 }
 0x132   :  { %948 = vmatpush3.bf16.msra.mxu1 %v1053_v56 }
 0x133   :  { %949 = vmatprep.subr.bf16.mxu1 %v1210_v0 }
 0x136   :  { %950 = vmatpush3.bf16.msra.mxu1 %v1054_v57 }
 0x137   :  { %951 = vmatprep.subr.bf16.mxu1 %v1210_v0 }
 0x13a   :  { %952 = vmatpush3.bf16.msra.mxu1 %v1055_v58 }
 0x13b   :  { %977 = vmatprep.subr.bf16.mxu1 %v1210_v0 }
 0x1dd   :  { %v279_v45 = vpop.f32.mrf.mxu1 }
 0x1de   :  { %v280_v46 = vadd.f32 %v279_v45, %v196_v44 }
 0x1df   :  { %v935_v47 = vpop.f32.mrf.mxu1 }
 0x1e0   :  { %v285_v48 = vmax.f32 %v280_v46, 0.0 }
 0x1e1   :  { %v282_v49 = vpop.f32.mrf.mxu1 }
 0x1e2   :  { %v286_v50 = vpack.c.bf16 %v285_v48, %v285_v48 }
 0x1e3   :  { %v936_v51 = vpop.f32.mrf.mxu1 }
 0x1e4   :  { %429 = vmatmul.mubr.bf16.vlgmr.msra.gmra.mxu0 %v286_v50 }
 0x1e5   :  { %973 = vmatprep.mubr.msk.bf16.mxu0 %vm1211_vm0, %v1210_v0  ;;  %958 = vmatpush3.bf16.msra.mxu0 %v1056_v59 }
 0x1e6   :  { %959 = vmatprep.subr.bf16.mxu0 %v1210_v0 }
 0x1e9   :  { %960 = vmatpush3.bf16.msra.mxu0 %v1057_v60 }
 0x1ea   :  { %961 = vmatprep.subr.bf16.mxu0 %v1210_v0 }
 0x1ed   :  { %962 = vmatpush3.bf16.msra.mxu0 %v1058_v61 }
 0x1ee   :  { %963 = vmatprep.subr.bf16.mxu0 %v1210_v0 }
 0x1f1   :  { %964 = vmatpush3.bf16.msra.mxu0 %v1059_v62 }
 0x1f2   :  { %965 = vmatprep.subr.bf16.mxu0 %v1210_v0 }
 0x1f5   :  { %966 = vmatpush3.bf16.msra.mxu0 %v1060_v63 }
 0x1f6   :  { %967 = vmatprep.subr.bf16.mxu0 %v1210_v0 }
 0x1f9   :  { %968 = vmatpush3.bf16.msra.mxu0 %v1061_v1 }
 0x1fa   :  { %969 = vmatprep.subr.bf16.mxu0 %v1210_v0 }
 0x1fd   :  { %970 = vmatpush3.bf16.msra.mxu0 %v1062_v2 }
 0x1fe   :  { %971 = vmatprep.subr.bf16.mxu0 %v1210_v0 }
 0x201   :  { %972 = vmatpush3.bf16.msra.mxu0 %v1063_v23 }
 0x2a4   :  { %v430_v10 = vpop.f32.mrf.mxu0 }
 0x2a5   :  { %v431_v11 = vadd.f32 %v430_v10, %v309_v8 }
 0x2a6   :  { %v432_v12 = vpop.f32.mrf.mxu0 }
 0x2a7   :  { %763 = vst [vmem:[#allocation11 + $0x8] sm:$0xff] %v431_v11  ;;  %v433_v13 = vadd.f32 %v432_v12, %v313_v9 }
 0x2a8   :  { %v434_v14 = vpop.f32.mrf.mxu0 }
 0x2a9   :  { %v437_v15 = vmul.f32 0.5, %v433_v13  ;;  %764 = vst [vmem:[#allocation11 + $0x10] sm:$0xff] %v433_v13 }
 0x2aa   :  { %v435_v16 = vpop.f32.mrf.mxu0 }
 0x2ab   :  { %v438_v17 = vmul.f32 1.442695, %v437_v15 }
 0x2ad   :  { %1072 = vpow2.f32 %v438_v17 }
 0x2ba   :  { %v1073_v19 = vpop.eup %1072 }
 0x2bb   :  { %v440_v20 = vmul.f32 %v1073_v19, %v72_v18 }
 0x2bd   :  { %v441_v21 = vadd.f32 %v440_v20, %v431_v11 }
 0x2bf   :  { %v442_v22 = vpack.c.bf16 %v441_v21, %v441_v21  ;;  %762 = vst [vmem:[#allocation11] sm:$0xff] %v441_v21 }
 0x2c1   :  { %954 = vmatmul.mubr.bf16.vlgmr.msra.gmra.mxu1 %v442_v22 }
 0x2c2   :  { %993 = vmatprep.mubr.msk.bf16.mxu1 %vm1211_vm0, %v1210_v0  ;;  %978 = vmatpush3.bf16.msra.mxu1 %v1064_v24 }
 0x2c3   :  { %979 = vmatprep.subr.bf16.mxu1 %v1210_v0 }
 0x2c6   :  { %980 = vmatpush3.bf16.msra.mxu1 %v1065_v25 }
 0x2c7   :  { %981 = vmatprep.subr.bf16.mxu1 %v1210_v0 }
 0x2ca   :  { %982 = vmatpush3.bf16.msra.mxu1 %v1066_v26 }
 0x2cb   :  { %983 = vmatprep.subr.bf16.mxu1 %v1210_v0 }
 0x2ce   :  { %984 = vmatpush3.bf16.msra.mxu1 %v1067_v27 }
 0x2cf   :  { %985 = vmatprep.subr.bf16.mxu1 %v1210_v0 }
 0x2d2   :  { %986 = vmatpush3.bf16.msra.mxu1 %v1068_v28 }
 0x2d3   :  { %987 = vmatprep.subr.bf16.mxu1 %v1210_v0 }
 0x2d6   :  { %988 = vmatpush3.bf16.msra.mxu1 %v1069_v29 }
 0x2d7   :  { %989 = vmatprep.subr.bf16.mxu1 %v1210_v0 }
 0x2da   :  { %990 = vmatpush3.bf16.msra.mxu1 %v1070_v36 }
 0x2db   :  { %991 = vmatprep.subr.bf16.mxu1 %v1210_v0 }
 0x2de   :  { %992 = vmatpush3.bf16.msra.mxu1 %v1071_v37 }
 0x381   :  { %v541_v30 = vpop.f32.mrf.mxu1 }
 0x382   :  { %v547_v31 = vmax.f32 %v541_v30, 0.0 }
 0x383   :  { %v955_v32 = vpop.f32.mrf.mxu1 }
 0x384   :  { %v548_v33 = vpack.c.bf16 %v547_v31, %v547_v31 }
 0x385   :  { %v544_v34 = vpop.f32.mrf.mxu1 }
 0x386   :  { %974 = vmatmul.mubr.bf16.vlgmr.msra.gmra.mxu0 %v548_v33 }
 0x387   :  { %v956_v35 = vpop.f32.mrf.mxu1 }
 0x446   :  { %v648_v39 = vpop.f32.mrf.mxu0 }
 0x447   :  { %v649_v40 = vadd.f32 %v648_v39, %v565_v38 }
 0x448   :  { %v975_v41 = vpop.f32.mrf.mxu0 }
 0x449   :  { %v654_v42 = vmax.f32 %v649_v40, 0.0 }
 0x44a   :  { %v651_v43 = vpop.f32.mrf.mxu0 }
 0x44b   :  { %v655_v44 = vpack.c.bf16 %v654_v42, %v654_v42 }
 0x44c   :  { %v976_v45 = vpop.f32.mrf.mxu0 }
 0x44d   :  { %994 = vmatmul.mubr.bf16.vlgmr.msra.gmra.mxu1 %v655_v44 }
 0x44e   :  { %1165 = shalt.err (!%p1162_p10)
}
 0x44f   :  { %784 = dma.vmem_to_hbm [thread:$0]  %s782_s3, 384, %s1318_s5, [#allocation12]   ;;  %v672_v0 = vld [vmem:[#allocation8 + $0x4] ss:$0 sm:$0xff] }
 0x450   :  { %s1214_s16 = smov [#allocation10]  }
 0x451   :  { %s771_s17 = sshll.u32 %s1214_s16, 4  ;;  %s772_s17 = int_to_ptr.vmem [resolvable:$true] %s771_s17 }
 0x452   :  { %s1174_s18 = scalar_lea.vmem %s772_s17, 128  ;;  %p1179_p12 = scmp.lt.s32.totalorder %s772_s17, %s772_s17 }
 0x453   :  { %p1175_p11 = scmp.ne.s32.totalorder %s772_s17, %s1174_s18  ;;  %p1180_p13 = scmp.lt.s32.totalorder %s1174_s18, %s1174_s18 }
 0x455   :  { %p1181_p0 = por %p1180_p13, %p1179_p12 }
 0x457   :  { %p1182_p1 = pnand %p1181_p0, %p1175_p11 }
 0x50d   :  { %v755_v46 = vpop.f32.mrf.mxu1 }
 0x50e   :  { %v756_v47 = vadd.f32 %v755_v46, %v672_v0 }
 0x50f   :  { %v995_v48 = vpop.f32.mrf.mxu1 }
 0x510   :  { %761 = vst [vmem:[#allocation10] sm:$0xff] %v756_v47 }
 0x511   :  { %v758_v49 = vpop.f32.mrf.mxu1 }
 0x512   :  { %1185 = shalt.err (!%p1182_p1)
}
 0x513   :  { %774 = dma.vmem_to_hbm [thread:$0]  %s772_s17, 128, %s1317_s4, [#allocation4]   ;;  %v996_v50 = vpop.f32.mrf.mxu1 }
 0x514   :  { %1200 = dma.done.wait [#allocation4], 128  }
 0x515   :  { %1201 = vsyncadd [#allocation4], 4294967168 }
 0x516   :  { %1202 = dma.done.wait [#allocation12], 384  }
 0x517   :  { %1203 = vsyncadd [#allocation12], 4294966912 }
 0x518   :  { %791 = vsyncpa [#allocation3], 1 }
 0x519   :  { %792 = vsyncpa [#allocation6], 1 }
 0x51a   :  { %793 = vsyncpa [#allocation9], 1 }
 0x51b   :  { %794 = vsyncpa [#allocation4], 1 }
 0x51c   :  { %795 = vsyncpa [#allocation12], 1 }

</bundles_post_ra>
